<compile_context>
chip_gen: v5e
topology: v5e:2x2
jax: 0.10.0
libtpu: 0.0.40
codegen_flags: <defaults>
</compile_context>

<pallas_src>
import functools

import jax
import jax.numpy as jnp
from jax.experimental import pallas as pl
from jax.experimental.pallas import tpu as pltpu


def tagger_kernel(sent_ref, table_ref, w_tag_ref, out_ref):
    T = sent_ref.shape[0]                 # tokens (scalar-prefetched ids in SMEM)
    V, W = table_ref.shape                # (vocab, 4H)
    H = W // 4
    # Lane-roll / bias-lane tricks assume the gate block is exactly one
    # 128-lane vreg wide; fail loudly otherwise (per review).
    assert W == 128 and w_tag_ref.shape[0] == W, "kernel hard-wired to 4*H == 128"

    # ---- in-kernel embedding gather (fused Embedding @ W_ih + bias table) ----
    rows = [table_ref[pl.ds(sent_ref[t], 1), :] for t in range(T)]
    gates = jnp.concatenate(rows, axis=0)            # (T, 4H) gate pre-activations
                                                     # columns [0.5*i, 0.5*o, g, 0.5*o]

    # ---- single EUP tanh pass; per-lane affine recovers sigmoid lanes ----
    t_all = jnp.tanh(gates)
    lane = jax.lax.broadcasted_iota(jnp.int32, gates.shape, 1)
    is_g = jnp.logical_and(lane >= 2 * H, lane < 3 * H)
    activ = jnp.where(is_g, t_all, 0.5 * t_all + 0.5)  # [sig(i), sig(o), tanh(g), sig(o)]

    # ---- lane-align gate groups via XLU rolls (direction-agnostic layout) ----
    g_al = pltpu.roll(activ, shift=2 * H, axis=1)    # lanes 0:H = tanh(g)
    o_al = pltpu.roll(activ, shift=H, axis=1)        # lanes 0:H = sigmoid(o)

    c_full = activ * g_al                 # lanes 0:H = i*g   (f*c0 term == 0: c0 == 0)
    h_full = o_al * jnp.tanh(c_full)      # lanes 0:H = o*tanh(c); lanes H:4H bounded junk

    # Bias lane: lane H == 1.0 multiplies row H of w_tag_ref (which holds b_tag);
    # the remaining junk lanes hit all-zero weight rows inside the MXU.
    h_full = jnp.where(lane == H, 1.0, h_full)

    tag = jnp.dot(h_full, w_tag_ref[...], preferred_element_type=jnp.float32)  # (T, tagset)

    # log_softmax over the tag dimension.
    m = jnp.max(tag, axis=-1, keepdims=True)
    z = tag - m
    out_ref[...] = z - jnp.log(jnp.sum(jnp.exp(z), axis=-1, keepdims=True))


def init_params(key, embedding_dim, hidden_dim, vocab_size, tagset_size):
    """Deterministic parameter init mirroring the PyTorch default inits."""
    k_emb, k_wih, k_whh, k_bih, k_bhh, k_wt, k_bt = jax.random.split(key, 7)
    bound = 1.0 / jnp.sqrt(hidden_dim)
    u = lambda k, shp: jax.random.uniform(k, shp, jnp.float32, -bound, bound)
    return {
        "embedding": jax.random.normal(k_emb, (vocab_size, embedding_dim), jnp.float32),
        # PyTorch convention (out_features, in_features); LSTM chunk order i,f,g,o.
        "w_ih": u(k_wih, (4 * hidden_dim, embedding_dim)),
        "w_hh": u(k_whh, (4 * hidden_dim, hidden_dim)),
        "b_ih": u(k_bih, (4 * hidden_dim,)),
        "b_hh": u(k_bhh, (4 * hidden_dim,)),
        "w_tag": u(k_wt, (tagset_size, hidden_dim)),
        "b_tag": u(k_bt, (tagset_size,)),
    }


def prepare_params(params):
    """One-time parameter prep (hoisted out of the forward pass):
      - drop the dead h0/c0/W_hh path, fold b_ih + b_hh into one bias
      - reorder gate columns to [i, o, g, o] (f dead, o duplicated so the
        in-kernel lane rolls are rotate-direction agnostic)
      - pre-scale the sigmoid columns (i, o) by 0.5 so one in-kernel tanh +
        per-lane affine yields both activations
      - fuse Embedding @ W_ih + bias into a (vocab, 4H) gate table (HIGHEST
        precision; this is offline, once)
      - zero-pad hidden2tag's weight to 4H input rows and park b_tag in row H
        (the in-kernel "bias lane").
    """
    w_ih = params["w_ih"]                              # (4H, E), rows [i|f|g|o]
    H4, _ = w_ih.shape
    H = H4 // 4
    assert H4 == 128, "prepare_params / kernel hard-wired to 4*H == 128"
    w_i, _, w_g, w_o = jnp.split(w_ih, 4, axis=0)
    b = params["b_ih"] + params["b_hh"]                # folded LSTM bias, (4H,)
    b_i, _, b_g, b_o = jnp.split(b, 4)

    w_gates = jnp.concatenate([0.5 * w_i, 0.5 * w_o, w_g, 0.5 * w_o], axis=0).T  # (E, 4H)
    b_gates = jnp.concatenate([0.5 * b_i, 0.5 * b_o, b_g, 0.5 * b_o])[None, :]   # (1, 4H)

    gate_table = (jnp.dot(params["embedding"], w_gates,
                          precision=jax.lax.Precision.HIGHEST)
                  + b_gates)                                                     # (V, 4H)

    tagset = params["w_tag"].shape[0]
    w_tag_pad = (jnp.zeros((H4, tagset), jnp.float32)
                 .at[:H, :].set(params["w_tag"].T)      # real hidden rows
                 .at[H, :].set(params["b_tag"]))        # bias lane row
    return {"gate_table": gate_table, "w_tag_pad": w_tag_pad}


@jax.jit
def tagger_forward(sentence, prepped):
    T = sentence.shape[0]
    tagset = prepped["w_tag_pad"].shape[-1]
    vmem = pl.BlockSpec(memory_space=pltpu.MemorySpace.VMEM)
    grid_spec = pltpu.PrefetchScalarGridSpec(
        num_scalar_prefetch=1,                 # sentence ids -> SMEM
        grid=(1,),                             # whole problem fits one grid point
        in_specs=[vmem, vmem],                 # gate_table, w_tag_pad (resident)
        out_specs=vmem,
    )
    return pl.pallas_call(
        tagger_kernel,
        out_shape=jax.ShapeDtypeStruct((T, tagset), jnp.float32),
        grid_spec=grid_spec,
        compiler_params=pltpu.CompilerParams(dimension_semantics=("arbitrary",)),
    )(sentence.astype(jnp.int32), prepped["gate_table"], prepped["w_tag_pad"])


def reference_forward(sentence, params, hidden_dim):
    """Pure-JAX reference of the original PyTorch math (h0 = c0 = 0)."""
    H = hidden_dim
    emb = params["embedding"][sentence]
    gates = (jnp.dot(emb, params["w_ih"].T, precision=jax.lax.Precision.HIGHEST)
             + params["b_ih"] + params["b_hh"])        # h0 == 0 -> no W_hh term
    i_g = jax.nn.sigmoid(gates[:, 0:H])
    g_g = jnp.tanh(gates[:, 2 * H:3 * H])
    o_g = jax.nn.sigmoid(gates[:, 3 * H:4 * H])
    c = i_g * g_g                                      # f*c0 term is zero
    h = o_g * jnp.tanh(c)
    tag = (jnp.dot(h, params["w_tag"].T, precision=jax.lax.Precision.HIGHEST)
           + params["b_tag"])
    return jax.nn.log_softmax(tag, axis=-1)


if __name__ == "__main__":
    embedding_dim = 32
    hidden_dim = 32
    vocab_size = 16
    tagset_size = 8
    seq_len = 8

    key = jax.random.PRNGKey(0)
    k_params, k_sent = jax.random.split(key)
    params = init_params(k_params, embedding_dim, hidden_dim, vocab_size, tagset_size)
    sentence = jax.random.randint(k_sent, (seq_len,), 0, vocab_size, dtype=jnp.int32)

    prepped = prepare_params(params)   # one-time prep, outside the jitted forward

    out = tagger_forward(sentence, prepped)
    out = jax.block_until_ready(out)

    ref = reference_forward(sentence, params, hidden_dim)
    assert out.shape == (seq_len, tagset_size)
    assert jnp.allclose(out, ref, atol=2e-5, rtol=2e-5), "mismatch vs reference"

    print("KERNEL_OK")
</pallas_src>

<mosaic_0001>
module attributes {stable_mosaic.version = 11 : i64} {
  func.func @tagger_kernel(%arg0: i32, %arg1: memref<8xi32, #tpu.memory_space<smem>>, %arg2: memref<16x128xf32, #tpu.memory_space<vmem>>, %arg3: memref<128x8xf32, #tpu.memory_space<vmem>>, %arg4: memref<8x8xf32, #tpu.memory_space<vmem>>) attributes {dimension_semantics = [#tpu.dimension_semantics<arbitrary>], iteration_bounds = array<i64: 1>, scalar_prefetch = 1 : i64, scratch_operands = 0 : i64, tpu.core_type = #tpu.core_type<tc>, window_params = [{pipeline_mode = #tpu.pipeline_mode<synchronous>, transform_indices = @transform_0, window_bounds = array<i64: 16, 128>}, {pipeline_mode = #tpu.pipeline_mode<synchronous>, transform_indices = @transform_1, window_bounds = array<i64: 128, 8>}, {pipeline_mode = #tpu.pipeline_mode<synchronous>, transform_indices = @transform_2, window_bounds = array<i64: 8, 8>}]} {
    %c0 = arith.constant 0 : index
    %0 = memref.load %arg1[%c0] : memref<8xi32, #tpu.memory_space<smem>>
    %1 = arith.index_cast %0 : i32 to index
    %c0_0 = arith.constant 0 : index
    %2 = vector.load %arg2[%1, %c0_0] : memref<16x128xf32, #tpu.memory_space<vmem>>, vector<1x128xf32>
    %c1 = arith.constant 1 : index
    %3 = memref.load %arg1[%c1] : memref<8xi32, #tpu.memory_space<smem>>
    %4 = arith.index_cast %3 : i32 to index
    %c0_1 = arith.constant 0 : index
    %5 = vector.load %arg2[%4, %c0_1] : memref<16x128xf32, #tpu.memory_space<vmem>>, vector<1x128xf32>
    %c2 = arith.constant 2 : index
    %6 = memref.load %arg1[%c2] : memref<8xi32, #tpu.memory_space<smem>>
    %7 = arith.index_cast %6 : i32 to index
    %c0_2 = arith.constant 0 : index
    %8 = vector.load %arg2[%7, %c0_2] : memref<16x128xf32, #tpu.memory_space<vmem>>, vector<1x128xf32>
    %c3 = arith.constant 3 : index
    %9 = memref.load %arg1[%c3] : memref<8xi32, #tpu.memory_space<smem>>
    %10 = arith.index_cast %9 : i32 to index
    %c0_3 = arith.constant 0 : index
    %11 = vector.load %arg2[%10, %c0_3] : memref<16x128xf32, #tpu.memory_space<vmem>>, vector<1x128xf32>
    %c4 = arith.constant 4 : index
    %12 = memref.load %arg1[%c4] : memref<8xi32, #tpu.memory_space<smem>>
    %13 = arith.index_cast %12 : i32 to index
    %c0_4 = arith.constant 0 : index
    %14 = vector.load %arg2[%13, %c0_4] : memref<16x128xf32, #tpu.memory_space<vmem>>, vector<1x128xf32>
    %c5 = arith.constant 5 : index
    %15 = memref.load %arg1[%c5] : memref<8xi32, #tpu.memory_space<smem>>
    %16 = arith.index_cast %15 : i32 to index
    %c0_5 = arith.constant 0 : index
    %17 = vector.load %arg2[%16, %c0_5] : memref<16x128xf32, #tpu.memory_space<vmem>>, vector<1x128xf32>
    %c6 = arith.constant 6 : index
    %18 = memref.load %arg1[%c6] : memref<8xi32, #tpu.memory_space<smem>>
    %19 = arith.index_cast %18 : i32 to index
    %c0_6 = arith.constant 0 : index
    %20 = vector.load %arg2[%19, %c0_6] : memref<16x128xf32, #tpu.memory_space<vmem>>, vector<1x128xf32>
    %c7 = arith.constant 7 : index
    %21 = memref.load %arg1[%c7] : memref<8xi32, #tpu.memory_space<smem>>
    %22 = arith.index_cast %21 : i32 to index
    %c0_7 = arith.constant 0 : index
    %23 = vector.load %arg2[%22, %c0_7] : memref<16x128xf32, #tpu.memory_space<vmem>>, vector<1x128xf32>
    %24 = tpu.concatenate %2, %5, %8, %11, %14, %17, %20, %23 in 0 : vector<1x128xf32>, vector<1x128xf32>, vector<1x128xf32>, vector<1x128xf32>, vector<1x128xf32>, vector<1x128xf32>, vector<1x128xf32>, vector<1x128xf32> -> vector<8x128xf32>
    %25 = math.tanh %24 : vector<8x128xf32>
    %26 = tpu.iota {dimensions = array<i32: 1>} : vector<8x128xi32>
    %c64_i32 = arith.constant 64 : i32
    %27 = vector.broadcast %c64_i32 : i32 to vector<8x128xi32>
    %28 = arith.cmpi sge, %26, %27 : vector<8x128xi32>
    %c96_i32 = arith.constant 96 : i32
    %29 = vector.broadcast %c96_i32 : i32 to vector<8x128xi32>
    %30 = arith.cmpi slt, %26, %29 : vector<8x128xi32>
    %31 = arith.andi %28, %30 : vector<8x128xi1>
    %cst = arith.constant 5.000000e-01 : f32
    %32 = vector.broadcast %cst : f32 to vector<8x128xf32>
    %33 = arith.mulf %32, %25 : vector<8x128xf32>
    %cst_8 = arith.constant 5.000000e-01 : f32
    %34 = vector.broadcast %cst_8 : f32 to vector<8x128xf32>
    %35 = arith.addf %33, %34 : vector<8x128xf32>
    %36 = arith.select %31, %25, %35 : vector<8x128xi1>, vector<8x128xf32>
    %c64_i32_9 = arith.constant 64 : i32
    %37 = tpu.dynamic_rotate %36 by %c64_i32_9 dim 1 : vector<8x128xf32>, i32 -> vector<8x128xf32>
    %c32_i32 = arith.constant 32 : i32
    %38 = tpu.dynamic_rotate %36 by %c32_i32 dim 1 : vector<8x128xf32>, i32 -> vector<8x128xf32>
    %39 = arith.mulf %36, %37 : vector<8x128xf32>
    %40 = math.tanh %39 : vector<8x128xf32>
    %41 = arith.mulf %38, %40 : vector<8x128xf32>
    %c32_i32_10 = arith.constant 32 : i32
    %42 = vector.broadcast %c32_i32_10 : i32 to vector<8x128xi32>
    %43 = arith.cmpi eq, %26, %42 : vector<8x128xi32>
    %cst_11 = arith.constant 1.000000e+00 : f32
    %44 = vector.broadcast %cst_11 : f32 to vector<8x128xf32>
    %45 = arith.select %43, %44, %41 : vector<8x128xi1>, vector<8x128xf32>
    %c0_12 = arith.constant 0 : index
    %c0_13 = arith.constant 0 : index
    %46 = vector.load %arg3[%c0_12, %c0_13] : memref<128x8xf32, #tpu.memory_space<vmem>>, vector<128x8xf32>
    %cst_14 = arith.constant dense<0.000000e+00> : vector<8x8xf32>
    %47 = tpu.matmul %45, %46, %cst_14 {dimension_numbers = #tpu.dot_dimension_numbers<[1], [0], [0], [1], [0, 0, 1, 1], [], []>} : vector<8x128xf32>, vector<128x8xf32>, vector<8x8xf32> -> vector<8x8xf32>
    %cst_15 = arith.constant dense<0xFF800000> : vector<8xf32>
    %48 = vector.multi_reduction <maximumf>, %47, %cst_15 [1] : vector<8x8xf32> to vector<8xf32>
    %49 = vector.shape_cast %48 : vector<8xf32> to vector<8x1xf32>
    %50 = vector.broadcast %49 : vector<8x1xf32> to vector<8x8xf32>
    %51 = arith.subf %47, %50 : vector<8x8xf32>
    %52 = math.exp %51 : vector<8x8xf32>
    %cst_16 = arith.constant dense<0.000000e+00> : vector<8xf32>
    %53 = vector.multi_reduction <add>, %52, %cst_16 [1] : vector<8x8xf32> to vector<8xf32>
    %54 = vector.shape_cast %53 : vector<8xf32> to vector<8x1xf32>
    %55 = math.log %54 : vector<8x1xf32>
    %56 = vector.broadcast %55 : vector<8x1xf32> to vector<8x8xf32>
    %57 = arith.subf %51, %56 : vector<8x8xf32>
    %c0_17 = arith.constant 0 : index
    %c0_18 = arith.constant 0 : index
    %58 = vector.load %arg4[%c0_17, %c0_18] : memref<8x8xf32, #tpu.memory_space<vmem>>, vector<8x8xf32>
    tpu.vector_store %arg4[%c0_17, %c0_18], %57 {strides = array<i32>} : memref<8x8xf32, #tpu.memory_space<vmem>>, vector<8x8xf32>,
    return
  }
  func.func @transform_0(%arg0: i32, %arg1: memref<8xi32, #tpu.memory_space<smem>>) -> (i32, i32) {
    %c0_i32 = arith.constant 0 : i32
    %c0_i32_0 = arith.constant 0 : i32
    %c0_i32_1 = arith.constant 0 : i32
    return %c0_i32, %c0_i32_0 : i32, i32
  }
  func.func @transform_1(%arg0: i32, %arg1: memref<8xi32, #tpu.memory_space<smem>>) -> (i32, i32) {
    %c0_i32 = arith.constant 0 : i32
    %c0_i32_0 = arith.constant 0 : i32
    %c0_i32_1 = arith.constant 0 : i32
    return %c0_i32, %c0_i32_0 : i32, i32
  }
  func.func @transform_2(%arg0: i32, %arg1: memref<8xi32, #tpu.memory_space<smem>>) -> (i32, i32) {
    %c0_i32 = arith.constant 0 : i32
    %c0_i32_0 = arith.constant 0 : i32
    %c0_i32_1 = arith.constant 0 : i32
    return %c0_i32, %c0_i32_0 : i32, i32
  }
}

</mosaic_0001>

<bundles_post_ra>
// kernel: tagger_forward.1
= control target key start
LH: loop header
LB: loop body
LE: loop exit
PB: predicated region body
PF: predicated region fallthrough
CT: control target
= control target key end

     0   :  { %s231_s15 = smov [#allocation3]   ;;  %s348_s0 = inlined_call_operand.vmem [shape: s32[8], index: 0, kind: input, shape index: {}]   ;;  %s349_s1 = inlined_call_operand.vmem [shape: f32[16,128], index: 1, kind: input, shape index: {}]   ;;  %s350_s2 = inlined_call_operand.vmem [shape: f32[128,8], index: 2, kind: input, shape index: {}]   ;;  %s351_s3 = inlined_call_operand.hbm [shape: f32[8,8], index: 3, kind: output, shape index: {}]  }
   0x1   :  { %s9_s14 = sshll.u32 %s348_s0, 4  ;;  %s10_s14 = int_to_ptr.vmem [resolvable:$true] %s9_s14 }
   0x2   :  { %12 = dma.vmem_to_smem %s10_s14, 16, %s231_s15, [#allocation2] }
   0x3   :  { %227 = dma.done.wait [#allocation2], 16 }
   0x4   :  { %228 = vsyncadd [#allocation2], 4294967280 }
   0x5   :  { %15 = sfence }
   0x6   :  { %s21_s16 = sld [smem:[#allocation3]] }
   0x7   :  { %s172_s17 = sld [smem:[#allocation3 + $0x1]] }
   0x8   :  { %s173_s18 = sld [smem:[#allocation3 + $0x2]] }
   0x9   :  { %16 = vsyncpa [#allocation5], 0  ;;  %s174_s19 = sld [smem:[#allocation3 + $0x3]]  ;;  %v113_v0 = vld [vmem:[%s350_s2 + $0x78] sm:$0xff]  ;;  %v112_v1 = vld [vmem:[%s350_s2 + $0x70] sm:$0xff]  ;;  %vm66_vm0 = vcmask 1040384   ;;  %v81_v26 = vlaneseq }
   0xa   :  { %s175_s20 = sld [smem:[#allocation3 + $0x4]]  ;;  %114 = vmatpush.msra.mxu0 %v113_v0  ;;  %v111_v4 = vld [vmem:[%s350_s2 + $0x68] sm:$0xff]  ;;  %vm68_vm1 = vcmask 1041408   ;;  %vm70_vm2 = vcmask 1042432   ;;  %v110_v9 = vld [vmem:[%s350_s2 + $0x60] sm:$0xff]  ;;  %vm72_vm3 = vcmask 1043456  }
   0xb   :  { %s258_s21 = sld [smem:[#allocation3 + $0x5]]  ;;  %vm74_vm4 = vcmask 1044480   ;;  %v109_v16 = vld [vmem:[%s350_s2 + $0x58] sm:$0xff]  ;;  %vm76_vm5 = vcmask 1045504   ;;  %vm78_vm6 = vcmask 1046528   ;;  %v108_v23 = vld [vmem:[%s350_s2 + $0x50] sm:$0xff] }
   0xc   :  { %s22_s24 = scalar_lea.vmem %s349_s1, %s21_s16  ;;  %s263_s25 = sld [smem:[#allocation3 + $0x6]]  ;;  %115 = vmatpush.msra.mxu0 %v112_v1  ;;  %v107_v28 = vld [vmem:[%s350_s2 + $0x48] sm:$0xff]  ;;  %v106_v30 = vld [vmem:[%s350_s2 + $0x40] sm:$0xff]  ;;  %v82_v31 = vand.u32 127, %v81_v26  ;;  %v105_v32 = vld [vmem:[%s350_s2 + $0x38] sm:$0xff]  ;;  %vm134_vm11 = vcmask 64512  }
   0xd   :  { %s25_s4 = scalar_lea.vmem %s349_s1, %s172_s17  ;;  %s274_s5 = sld [smem:[#allocation3 + $0x7]]  ;;  %v23_v2 = vld [vmem:[%s22_s24] sm:$0x1]  ;;  %v104_v33 = vld [vmem:[%s350_s2 + $0x30] sm:$0xff]  ;;  %v103_v38 = vld [vmem:[%s350_s2 + $0x28] sm:$0xff] }
   0xe   :  { %v26_v3 = vld [vmem:[%s25_s4] sm:$0x1]  ;;  %s28_s8 = scalar_lea.vmem %s349_s1, %s173_s18  ;;  %116 = vmatpush.msra.mxu0 %v111_v4  ;;  %vm83_vm7 = vcmp.ge.s32.totalorder %v82_v31, 64  ;;  %vm84_vm8 = vcmp.lt.s32.totalorder %v82_v31, 96  ;;  %s232_s11 = smov 64   ;;  %v101_v40 = vld [vmem:[%s350_s2 + $0x18] sm:$0xff] }
   0xf   :  { %v29_v5 = vld [vmem:[%s28_s8] sm:$0x1]  ;;  %s31_s13 = scalar_lea.vmem %s349_s1, %s174_s19  ;;  %v46_v6 = vrot.slane %v26_v3, 7  ;;  %vm85_vm9 = vmand %vm83_vm7, %vm84_vm8  ;;  %s233_s12 = smov 32   ;;  %v100_v41 = vld [vmem:[%s350_s2 + $0x10] sm:$0xff]  ;;  %vm96_vm10 = vcmp.eq.s32.totalorder %v82_v31, 32 }
  0x10   :  { %v32_v7 = vld [vmem:[%s31_s13] sm:$0x1]  ;;  %s34_s16 = scalar_lea.vmem %s349_s1, %s175_s20  ;;  %v49_v8 = vrot.slane %v29_v5, 6  ;;  %117 = vmatpush.msra.mxu0 %v110_v9  ;;  %v99_v42 = vld [vmem:[%s350_s2 + $0x8] sm:$0xff] }
  0x11   :  { %v35_v10 = vld [vmem:[%s34_s16] sm:$0x1]  ;;  %s37_s19 = scalar_lea.vmem %s349_s1, %s258_s21  ;;  %v52_v11 = vrot.slane %v32_v7, 5  ;;  %v67_v12 = vsel %vm66_vm0, %v23_v2, %v46_v6  ;;  %s155_s21 = sshll.u32 %s351_s3, 4  ;;  %s156_s21 = int_to_ptr.hbm [resolvable:$true] %s155_s21 }
  0x12   :  { %v38_v13 = vld [vmem:[%s37_s19] sm:$0x1]  ;;  %s40_s20 = scalar_lea.vmem %s349_s1, %s263_s25  ;;  %v55_v14 = vrot.slane %v35_v10, 4  ;;  %v69_v15 = vsel %vm68_vm1, %v67_v12, %v49_v8  ;;  %118 = vmatpush.msra.mxu0 %v109_v16 }
  0x13   :  { %v41_v17 = vld [vmem:[%s40_s20] sm:$0x1]  ;;  %s43_s29 = scalar_lea.vmem %s349_s1, %s274_s5  ;;  %v58_v18 = vrot.slane %v38_v13, 3  ;;  %v71_v19 = vsel %vm70_vm2, %v69_v15, %v52_v11 }
  0x14   :  { %v44_v20 = vld [vmem:[%s43_s29] sm:$0x1]  ;;  %v61_v21 = vrot.slane %v41_v17, 2  ;;  %v73_v22 = vsel %vm72_vm3, %v71_v19, %v55_v14  ;;  %119 = vmatpush.msra.mxu0 %v108_v23 }
  0x15   :  { %v64_v24 = vrot.slane %v44_v20, 1  ;;  %v75_v25 = vsel %vm74_vm4, %v73_v22, %v58_v18  ;;  %v102_v39 = vld [vmem:[%s350_s2 + $0x20] sm:$0xff] }
  0x16   :  { %v77_v27 = vsel %vm76_vm5, %v75_v25, %v61_v21  ;;  %120 = vmatpush.msra.mxu0 %v107_v28  ;;  %v98_v43 = vld [vmem:[%s350_s2] sm:$0xff]  ;;  %s234_s2 = smov [#allocation4]  }
  0x17   :  { %v79_v29 = vsel %vm78_vm6, %v77_v27, %v64_v24  ;;  %s153_s26 = sshll.u32 %s234_s2, 4  ;;  %s154_s26 = int_to_ptr.vmem [resolvable:$true] %s153_s26 }
  0x18   :  { %183 = vtanh.f32 %v79_v29  ;;  %121 = vmatpush.msra.mxu0 %v106_v30 }
  0x1a   :  { %122 = vmatpush.msra.mxu0 %v105_v32 }
  0x1c   :  { %123 = vmatpush.msra.mxu0 %v104_v33 }
  0x1e   :  { %v184_v34 = vpop.eup %183  ;;  %124 = vmatpush.msra.mxu0 %v103_v38 }
  0x1f   :  { %v86_v35 = vmul.f32 0.5, %v184_v34 }
  0x20   :  { %125 = vmatpush.msra.mxu0 %v102_v39 }
  0x21   :  { %v87_v36 = vadd.f32 0.5, %v86_v35 }
  0x22   :  { %126 = vmatpush.msra.mxu0 %v101_v40 }
  0x23   :  { %v88_v37 = vsel %vm85_vm9, %v184_v34, %v87_v36 }
  0x24   :  { %89 = vrot.lane.b32.xlu0 %v88_v37, %s232_s11  ;;  %127 = vmatpush.msra.mxu0 %v100_v41 }
  0x26   :  { %128 = vmatpush.msra.mxu0 %v99_v42 }
  0x28   :  { %129 = vmatpush.msra.mxu0 %v98_v43 }
  0x2c   :  { %91 = vrot.lane.b32.xlu0 %v88_v37, %s233_s12 }
  0x96   :  { %v90_v44 = vpop.permute.xlu0 %89 }
  0x97   :  { %v93_v45 = vmul.f32 %v90_v44, %v88_v37 }
  0x99   :  { %185 = vtanh.f32 %v93_v45 }
  0x9e   :  { %v92_v46 = vpop.permute.xlu0 %91 }
  0x9f   :  { %v186_v47 = vpop.eup %185 }
  0xa0   :  { %v95_v48 = vmul.f32 %v186_v47, %v92_v46 }
  0xa2   :  { %v97_v49 = vsel %vm96_vm10, 1.0, %v95_v48 }
  0xa3   :  { %130 = vmatmul.f32.vlgmr.msra.gmra.mxu0 %v97_v49 }
 0x120   :  { %v131_v50 = vpop.f32.mrf.mxu0 }
 0x121   :  { %v135_v51 = vsel %vm134_vm11, %v131_v50, -inf }
 0x122   :  { %136 = vmax.xlane.f32.xlu1 %v135_v51 }
 0x195   :  { %v137_v52 = vpop.xlane.xlu1 %136 }
 0x196   :  { %v138_v53 = vsub.f32 %v131_v50, %v137_v52 }
 0x198   :  { %v139_v54 = vmul.f32 1.442695, %v138_v53 }
 0x19a   :  { %187 = vpow2.f32 %v139_v54 }
 0x1a0   :  { %v188_v55 = vpop.eup %187 }
 0x1a1   :  { %v141_v56 = vsel %vm134_vm11, %v188_v55, 0.0 }
 0x1a2   :  { %142 = vadd.xlane.f32.xlu1 %v141_v56 }
 0x215   :  { %v143_v57 = vpop.xlane.xlu1 %142 }
 0x216   :  { %189 = vlog2.f32 %v143_v57 }
 0x21c   :  { %v190_v58 = vpop.eup %189 }
 0x21d   :  { %v145_v59 = vmul.f32 0.6931472, %v190_v58 }
 0x21f   :  { %v146_v60 = vsub.f32 %v138_v53, %v145_v59 }
 0x221   :  { %147 = vst.msk [vmem:[#allocation4] sm:$0xff] %vm134_vm11, %v146_v60 }
 0x222   :  { %158 = dma.vmem_to_hbm [thread:$0]  %s154_s26, 128, %s156_s21, [#allocation5]  }
 0x223   :  { %229 = dma.done.wait [#allocation5], 128  }
 0x224   :  { %230 = vsyncadd [#allocation5], 4294967168 }
 0x225   :  { %163 = vsyncpa [#allocation5], 1 }

</bundles_post_ra>
